<compile_context>
chip_gen: v5e
topology: v5e:2x2
jax: 0.10.0
libtpu: 0.0.40
codegen_flags: <defaults>
</compile_context>

<pallas_src>
from functools import partial

import jax
import jax.numpy as jnp
from jax.experimental import pallas as pl
from jax.experimental.pallas import tpu as pltpu

# SELU constants (match torch.nn.SELU)
_SELU_ALPHA = 1.6732632423543772
_SELU_SCALE = 1.0507009873554805

_LANE = 128
_SUBLANE = 8
_MIN_SPLIT_ROWS = 4096   # only halve a single full-batch tile if it is >= this


def _round_up(n, m):
    return ((n + m - 1) // m) * m


def _selu_core(v):
    # SELU with the outer `scale` already folded into the *next* layer's
    # weights (see prepare_params):  where(v>0, v, alpha*(exp(v)-1)).
    # exp goes to the EUP (separate bundle slot); the rest is VPU.
    return jnp.where(v > 0.0, v, _SELU_ALPHA * (jnp.exp(v) - 1.0))


def mlp_kernel(x_ref, w1_ref, b1_ref, w2_ref, b2_ref, w3_ref, b3_ref, o_ref):
    mxu_dt = x_ref.dtype                                               # bf16 (or f32)
    x = x_ref[...]                                                     # (tb, In)
    h = jnp.dot(x, w1_ref[...], preferred_element_type=jnp.float32)    # (tb, Hp) f32
    h = _selu_core(h + b1_ref[...])                                    # bias (1, Hp) f32
    h = jnp.dot(h.astype(mxu_dt), w2_ref[...],
                preferred_element_type=jnp.float32)                    # (tb, Hp)
    h = _selu_core(h + b2_ref[...])
    o = jnp.dot(h.astype(mxu_dt), w3_ref[...],
                preferred_element_type=jnp.float32)                    # (tb, Out) compact
    o_ref[...] = (o + b3_ref[...]).astype(o_ref.dtype)                 # minimal writeback


def prepare_params(params, *, mxu_dtype=jnp.bfloat16):
    """One-time prep: pad hidden dim to 128 lanes, fold SELU scale into the
    next layer's weights, cast matmul operands to mxu_dtype (biases stay f32).
    Run once per parameter set and reuse the result across forward calls."""
    w1, b1 = params["w1"], params["b1"]
    w2, b2 = params["w2"], params["b2"]
    w3, b3 = params["w3"], params["b3"]
    In, H = w1.shape
    Out = w3.shape[1]
    Hp = _round_up(H, _LANE)            # 100 -> 128 lane-dense hidden
    f32 = jnp.float32

    # Padded hidden units stay exactly 0 through bias-add and SELU, and the
    # padded rows of w2/w3 are 0, so they contribute nothing downstream.
    w1p = jnp.zeros((In, Hp), f32).at[:, :H].set(w1).astype(mxu_dtype)
    w2p = jnp.zeros((Hp, Hp), f32).at[:H, :H].set(_SELU_SCALE * w2).astype(mxu_dtype)
    w3p = jnp.zeros((Hp, Out), f32).at[:H, :].set(_SELU_SCALE * w3).astype(mxu_dtype)
    b1p = jnp.zeros((1, Hp), f32).at[:, :H].set(jnp.reshape(b1, (1, -1)))
    b2p = jnp.zeros((1, Hp), f32).at[:, :H].set(jnp.reshape(b2, (1, -1)))
    b3p = jnp.reshape(b3, (1, Out)).astype(f32)
    return {"w1": w1p, "b1": b1p, "w2": w2p, "b2": b2p, "w3": w3p, "b3": b3p}


def _pick_batch_tile(batch, block_b):
    bp8 = _round_up(max(batch, 1), _SUBLANE)
    tb = min(_round_up(block_b, _SUBLANE), bp8)
    if tb == bp8 and bp8 >= _MIN_SPLIT_ROWS:
        # Whole batch fits one big tile: halve it so the "parallel" grid axis
        # has 2 steps and both v7x TensorCores get work (no-op gain elsewhere).
        tb = _round_up(pl.cdiv(bp8, 2), _SUBLANE)
    bp = _round_up(bp8, tb)
    return tb, bp


@partial(jax.jit, static_argnames=("block_b",))
def neural_net_forward(x, prep, *, block_b=4096):
    """x: (B, input_size) float32.  prep: output of prepare_params()."""
    w1p, b1p = prep["w1"], prep["b1"]
    w2p, b2p = prep["w2"], prep["b2"]
    w3p, b3p = prep["w3"], prep["b3"]
    B, In = x.shape
    Hp = w1p.shape[1]
    Out = w3p.shape[1]
    mxu_dtype = w1p.dtype

    tb, Bp = _pick_batch_tile(B, block_b)

    # Input cast (+ optional batch pad) fuses with the pallas_call under jit.
    xq = x.astype(mxu_dtype)
    xp = xq if Bp == B else jnp.zeros((Bp, In), mxu_dtype).at[:B].set(xq)

    grid = (Bp // tb,)

    # Weights/biases: constant index_map -> DMA'd once, resident in VMEM.
    resident = lambda shape: pl.BlockSpec(shape, lambda i: (0, 0))

    itemsize = jnp.dtype(mxu_dtype).itemsize
    flops = 2 * Bp * (In * Hp + Hp * Hp + Hp * Out)
    bytes_accessed = (
        Bp * In * itemsize                               # x in
        + (In * Hp + Hp * Hp + Hp * Out) * itemsize      # weights (resident)
        + (2 * Hp + Out) * 4                             # biases (f32)
        + Bp * Out * 4                                   # compact f32 output
    )
    cost = pl.CostEstimate(flops=flops,
                           transcendentals=2 * Bp * Hp,
                           bytes_accessed=bytes_accessed)

    out = pl.pallas_call(
        mlp_kernel,
        out_shape=jax.ShapeDtypeStruct((Bp, Out), jnp.float32),
        grid=grid,
        in_specs=[
            pl.BlockSpec((tb, In), lambda i: (i, 0)),    # streamed x tiles
            resident((In, Hp)), resident((1, Hp)),
            resident((Hp, Hp)), resident((1, Hp)),
            resident((Hp, Out)), resident((1, Out)),
        ],
        out_specs=pl.BlockSpec((tb, Out), lambda i: (i, 0)),
        compiler_params=pltpu.CompilerParams(
            dimension_semantics=("parallel",),           # shard batch across TCs
        ),
        cost_estimate=cost,
    )(xp, w1p, b1p, w2p, b2p, w3p, b3p)

    # Only a cheap row-slice remains (reads B*Out*4 bytes), and only when the
    # batch had to be padded; the lane padding/slice is gone entirely.
    return out if Bp == B else out[:B]


def init_params(key, input_size, hidden_size, output_size):
    """Deterministic parameter init (PyTorch-style uniform fan_in bounds)."""
    ks = jax.random.split(key, 6)

    def linear(kw, kb, fan_in, fan_out):
        bound = 1.0 / (fan_in ** 0.5)
        w = jax.random.uniform(kw, (fan_in, fan_out), jnp.float32, -bound, bound)
        b = jax.random.uniform(kb, (1, fan_out), jnp.float32, -bound, bound)
        return w, b

    w1, b1 = linear(ks[0], ks[1], input_size, hidden_size)
    w2, b2 = linear(ks[2], ks[3], hidden_size, hidden_size)
    w3, b3 = linear(ks[4], ks[5], hidden_size, output_size)
    return {"w1": w1, "b1": b1, "w2": w2, "b2": b2, "w3": w3, "b3": b3}


def _ref_forward(x, params):
    """Pure-f32 reference matching the PyTorch module exactly (no folding)."""
    def selu(v):
        return _SELU_SCALE * jnp.where(v > 0.0, v, _SELU_ALPHA * (jnp.exp(v) - 1.0))
    h = selu(x @ params["w1"] + params["b1"])
    h = selu(h @ params["w2"] + params["b2"])
    return h @ params["w3"] + params["b3"]


def _ref_forward_prepped(x, prep):
    """Dtype- and math-matched reference mirroring the kernel (folded scale)."""
    dt = prep["w1"].dtype
    h = jnp.dot(x.astype(dt), prep["w1"], preferred_element_type=jnp.float32) + prep["b1"]
    h = _selu_core(h)
    h = jnp.dot(h.astype(dt), prep["w2"], preferred_element_type=jnp.float32) + prep["b2"]
    h = _selu_core(h)
    return jnp.dot(h.astype(dt), prep["w3"], preferred_element_type=jnp.float32) + prep["b3"]


if __name__ == "__main__":
    INPUT_SIZE = 32
    HIDDEN_SIZE = 100   # fixed by the module
    OUTPUT_SIZE = 16
    BATCH = 8

    key = jax.random.PRNGKey(0)
    k_x, k_p, k_big = jax.random.split(key, 3)
    x = jax.random.normal(k_x, (BATCH, INPUT_SIZE), jnp.float32)
    params = init_params(k_p, INPUT_SIZE, HIDDEN_SIZE, OUTPUT_SIZE)

    ref_f32 = _ref_forward(x, params)

    # 1) f32 MXU path: near-exact check against the plain f32 reference.
    prep_f32 = prepare_params(params, mxu_dtype=jnp.float32)
    out_f32 = neural_net_forward(x, prep_f32)
    jax.block_until_ready(out_f32)
    assert out_f32.shape == (BATCH, OUTPUT_SIZE)
    assert jnp.allclose(out_f32, ref_f32, atol=1e-4, rtol=1e-4)

    # 2) bf16 MXU path (default): tight check vs. a dtype/math-matched
    #    reference, loose check vs. the full-f32 module semantics.
    prep_bf16 = prepare_params(params)                   # bf16 MXU inputs
    out_bf16 = neural_net_forward(x, prep_bf16)
    jax.block_until_ready(out_bf16)
    assert jnp.allclose(out_bf16, _ref_forward_prepped(x, prep_bf16),
                        atol=1e-3, rtol=1e-3)
    assert jnp.allclose(out_bf16, ref_f32, atol=5e-2, rtol=5e-2)

    # 3) Larger ragged batch: exercises the batch grid (block_b=4096),
    #    batch-row padding, and the 2-way tile split path when applicable.
    BIG = 3000
    x_big = jax.random.normal(k_big, (BIG, INPUT_SIZE), jnp.float32)
    out_big = neural_net_forward(x_big, prep_bf16)
    jax.block_until_ready(out_big)
    assert out_big.shape == (BIG, OUTPUT_SIZE)
    assert jnp.allclose(out_big, _ref_forward_prepped(x_big, prep_bf16),
                        atol=1e-3, rtol=1e-3)

    print("KERNEL_OK")
</pallas_src>

<mosaic_0001>
module attributes {stable_mosaic.version = 11 : i64} {
  func.func @mlp_kernel(%arg0: i32, %arg1: memref<8x32xf32, #tpu.memory_space<vmem>>, %arg2: memref<32x128xf32, #tpu.memory_space<vmem>>, %arg3: memref<1x128xf32, #tpu.memory_space<vmem>>, %arg4: memref<128x128xf32, #tpu.memory_space<vmem>>, %arg5: memref<1x128xf32, #tpu.memory_space<vmem>>, %arg6: memref<128x16xf32, #tpu.memory_space<vmem>>, %arg7: memref<1x16xf32, #tpu.memory_space<vmem>>, %arg8: memref<8x16xf32, #tpu.memory_space<vmem>>) attributes {dimension_semantics = [#tpu.dimension_semantics<parallel>], iteration_bounds = array<i64: 1>, scalar_prefetch = 0 : i64, scratch_operands = 0 : i64, tpu.core_type = #tpu.core_type<tc>, window_params = [{transform_indices = @transform_0, window_bounds = array<i64: 8, 32>}, {pipeline_mode = #tpu.pipeline_mode<synchronous>, transform_indices = @transform_1, window_bounds = array<i64: 32, 128>}, {pipeline_mode = #tpu.pipeline_mode<synchronous>, transform_indices = @transform_2, window_bounds = array<i64: 1, 128>}, {pipeline_mode = #tpu.pipeline_mode<synchronous>, transform_indices = @transform_3, window_bounds = array<i64: 128, 128>}, {pipeline_mode = #tpu.pipeline_mode<synchronous>, transform_indices = @transform_4, window_bounds = array<i64: 1, 128>}, {pipeline_mode = #tpu.pipeline_mode<synchronous>, transform_indices = @transform_5, window_bounds = array<i64: 128, 16>}, {pipeline_mode = #tpu.pipeline_mode<synchronous>, transform_indices = @transform_6, window_bounds = array<i64: 1, 16>}, {transform_indices = @transform_7, window_bounds = array<i64: 8, 16>}]} {
    %c0 = arith.constant 0 : index
    %c0_0 = arith.constant 0 : index
    %0 = vector.load %arg1[%c0, %c0_0] : memref<8x32xf32, #tpu.memory_space<vmem>>, vector<8x32xf32>
    %c0_1 = arith.constant 0 : index
    %c0_2 = arith.constant 0 : index
    %1 = vector.load %arg2[%c0_1, %c0_2] : memref<32x128xf32, #tpu.memory_space<vmem>>, vector<32x128xf32>
    %cst = arith.constant dense<0.000000e+00> : vector<8x128xf32>
    %2 = tpu.matmul %0, %1, %cst {dimension_numbers = #tpu.dot_dimension_numbers<[1], [0], [0], [1], [0, 0, 1, 1], [], []>} : vector<8x32xf32>, vector<32x128xf32>, vector<8x128xf32> -> vector<8x128xf32>
    %c0_3 = arith.constant 0 : index
    %c0_4 = arith.constant 0 : index
    %3 = vector.load %arg3[%c0_3, %c0_4] : memref<1x128xf32, #tpu.memory_space<vmem>>, vector<1x128xf32>
    %4 = vector.broadcast %3 : vector<1x128xf32> to vector<8x128xf32>
    %5 = arith.addf %2, %4 : vector<8x128xf32>
    %cst_5 = arith.constant 0.000000e+00 : f32
    %6 = vector.broadcast %cst_5 : f32 to vector<8x128xf32>
    %7 = arith.cmpf ogt, %5, %6 : vector<8x128xf32>
    %8 = math.exp %5 : vector<8x128xf32>
    %cst_6 = arith.constant 1.000000e+00 : f32
    %9 = vector.broadcast %cst_6 : f32 to vector<8x128xf32>
    %10 = arith.subf %8, %9 : vector<8x128xf32>
    %cst_7 = arith.constant 1.67326319 : f32
    %11 = vector.broadcast %cst_7 : f32 to vector<8x128xf32>
    %12 = arith.mulf %11, %10 : vector<8x128xf32>
    %13 = arith.select %7, %5, %12 : vector<8x128xi1>, vector<8x128xf32>
    %c0_8 = arith.constant 0 : index
    %c0_9 = arith.constant 0 : index
    %14 = vector.load %arg4[%c0_8, %c0_9] : memref<128x128xf32, #tpu.memory_space<vmem>>, vector<128x128xf32>
    %cst_10 = arith.constant dense<0.000000e+00> : vector<8x128xf32>
    %15 = tpu.matmul %13, %14, %cst_10 {dimension_numbers = #tpu.dot_dimension_numbers<[1], [0], [0], [1], [0, 0, 1, 1], [], []>} : vector<8x128xf32>, vector<128x128xf32>, vector<8x128xf32> -> vector<8x128xf32>
    %c0_11 = arith.constant 0 : index
    %c0_12 = arith.constant 0 : index
    %16 = vector.load %arg5[%c0_11, %c0_12] : memref<1x128xf32, #tpu.memory_space<vmem>>, vector<1x128xf32>
    %17 = vector.broadcast %16 : vector<1x128xf32> to vector<8x128xf32>
    %18 = arith.addf %15, %17 : vector<8x128xf32>
    %cst_13 = arith.constant 0.000000e+00 : f32
    %19 = vector.broadcast %cst_13 : f32 to vector<8x128xf32>
    %20 = arith.cmpf ogt, %18, %19 : vector<8x128xf32>
    %21 = math.exp %18 : vector<8x128xf32>
    %cst_14 = arith.constant 1.000000e+00 : f32
    %22 = vector.broadcast %cst_14 : f32 to vector<8x128xf32>
    %23 = arith.subf %21, %22 : vector<8x128xf32>
    %cst_15 = arith.constant 1.67326319 : f32
    %24 = vector.broadcast %cst_15 : f32 to vector<8x128xf32>
    %25 = arith.mulf %24, %23 : vector<8x128xf32>
    %26 = arith.select %20, %18, %25 : vector<8x128xi1>, vector<8x128xf32>
    %c0_16 = arith.constant 0 : index
    %c0_17 = arith.constant 0 : index
    %27 = vector.load %arg6[%c0_16, %c0_17] : memref<128x16xf32, #tpu.memory_space<vmem>>, vector<128x16xf32>
    %cst_18 = arith.constant dense<0.000000e+00> : vector<8x16xf32>
    %28 = tpu.matmul %26, %27, %cst_18 {dimension_numbers = #tpu.dot_dimension_numbers<[1], [0], [0], [1], [0, 0, 1, 1], [], []>} : vector<8x128xf32>, vector<128x16xf32>, vector<8x16xf32> -> vector<8x16xf32>
    %c0_19 = arith.constant 0 : index
    %c0_20 = arith.constant 0 : index
    %29 = vector.load %arg7[%c0_19, %c0_20] : memref<1x16xf32, #tpu.memory_space<vmem>>, vector<1x16xf32>
    %30 = vector.broadcast %29 : vector<1x16xf32> to vector<8x16xf32>
    %31 = arith.addf %28, %30 : vector<8x16xf32>
    %c0_21 = arith.constant 0 : index
    %c0_22 = arith.constant 0 : index
    %32 = vector.load %arg8[%c0_21, %c0_22] : memref<8x16xf32, #tpu.memory_space<vmem>>, vector<8x16xf32>
    tpu.vector_store %arg8[%c0_21, %c0_22], %31 {strides = array<i32>} : memref<8x16xf32, #tpu.memory_space<vmem>>, vector<8x16xf32>,
    return
  }
  func.func @transform_0(%arg0: i32) -> (i32, i32) {
    %c0_i32 = arith.constant 0 : i32
    %c0_i32_0 = arith.constant 0 : i32
    return %arg0, %c0_i32 : i32, i32
  }
  func.func @transform_1(%arg0: i32) -> (i32, i32) {
    %c0_i32 = arith.constant 0 : i32
    %c0_i32_0 = arith.constant 0 : i32
    %c0_i32_1 = arith.constant 0 : i32
    return %c0_i32, %c0_i32_0 : i32, i32
  }
  func.func @transform_2(%arg0: i32) -> (i32, i32) {
    %c0_i32 = arith.constant 0 : i32
    %c0_i32_0 = arith.constant 0 : i32
    %c0_i32_1 = arith.constant 0 : i32
    return %c0_i32, %c0_i32_0 : i32, i32
  }
  func.func @transform_3(%arg0: i32) -> (i32, i32) {
    %c0_i32 = arith.constant 0 : i32
    %c0_i32_0 = arith.constant 0 : i32
    %c0_i32_1 = arith.constant 0 : i32
    return %c0_i32, %c0_i32_0 : i32, i32
  }
  func.func @transform_4(%arg0: i32) -> (i32, i32) {
    %c0_i32 = arith.constant 0 : i32
    %c0_i32_0 = arith.constant 0 : i32
    %c0_i32_1 = arith.constant 0 : i32
    return %c0_i32, %c0_i32_0 : i32, i32
  }
  func.func @transform_5(%arg0: i32) -> (i32, i32) {
    %c0_i32 = arith.constant 0 : i32
    %c0_i32_0 = arith.constant 0 : i32
    %c0_i32_1 = arith.constant 0 : i32
    return %c0_i32, %c0_i32_0 : i32, i32
  }
  func.func @transform_6(%arg0: i32) -> (i32, i32) {
    %c0_i32 = arith.constant 0 : i32
    %c0_i32_0 = arith.constant 0 : i32
    %c0_i32_1 = arith.constant 0 : i32
    return %c0_i32, %c0_i32_0 : i32, i32
  }
  func.func @transform_7(%arg0: i32) -> (i32, i32) {
    %c0_i32 = arith.constant 0 : i32
    %c0_i32_0 = arith.constant 0 : i32
    return %arg0, %c0_i32 : i32, i32
  }
}

</mosaic_0001>

<bundles_post_ra>
// kernel: neural_net_forward.1
= control target key start
LH: loop header
LB: loop body
LE: loop exit
PB: predicated region body
PF: predicated region fallthrough
CT: control target
= control target key end

     0   :  { %12 = vsyncpa [#allocation3], 0  ;;  %s411_s0 = inlined_call_operand.vmem [shape: f32[8,32], index: 0, kind: input, shape index: {}]   ;;  %s412_s1 = inlined_call_operand.hbm [shape: f32[32,128], index: 1, kind: input, shape index: {}]   ;;  %s413_s2 = inlined_call_operand.vmem [shape: f32[1,128], index: 2, kind: input, shape index: {}]   ;;  %s414_s3 = inlined_call_operand.vmem [shape: f32[128,128], index: 3, kind: input, shape index: {}]   ;;  %s415_s4 = inlined_call_operand.vmem [shape: f32[1,128], index: 4, kind: input, shape index: {}]   ;;  %s416_s5 = inlined_call_operand.vmem [shape: f32[128,16], index: 5, kind: input, shape index: {}]   ;;  %s417_s6 = inlined_call_operand.vmem [shape: f32[1,16], index: 6, kind: input, shape index: {}]   ;;  %s418_s7 = inlined_call_operand.hbm [shape: f32[8,16], index: 7, kind: output, shape index: {}]  }
   0x1   :  { %13 = vsyncpa [#allocation4], 0  ;;  %s20_s26 = sshll.u32 %s412_s1, 4  ;;  %s253_s27 = smov [#allocation2]   ;;  %s21_s26 = int_to_ptr.hbm [resolvable:$true] %s20_s26 }
   0x2   :  { %s22_s28 = sshll.u32 %s253_s27, 4  ;;  %s254_s29 = smov 128   ;;  %s23_s28 = int_to_ptr.vmem [resolvable:$true] %s22_s28 }
   0x3   :  { %s255_s30 = smov 8  }
   0x4   :  { %28 = dma.hbm_to_vmem [thread:$0]  %s21_s26, 512, %s23_s28, [#allocation3], %s254_s29, %s254_s29, %s255_s30  }
   0x5   :  { %249 = dma.done.wait [#allocation3], 512  }
   0x6   :  { %250 = vsyncadd [#allocation3], 4294966784  ;;  %v47_v0 = vld [vmem:[#allocation2 + $0x18] sm:$0xff]  ;;  %v46_v1 = vld [vmem:[#allocation2 + $0x10] sm:$0xff]  ;;  %vm52_vm0 = vcmask 261120   ;;  %vm168_vm3 = vcmask 130048  }
   0x7   :  { %68 = vmatpush.msra.mxu0 %v47_v0  ;;  %v97_v2 = vld [vmem:[%s414_s3 + $0x78] sm:$0xff]  ;;  %v45_v3 = vld [vmem:[#allocation2 + $0x8] sm:$0xff]  ;;  %v96_v4 = vld [vmem:[%s414_s3 + $0x70] sm:$0xff] }
   0x8   :  { %102 = vmatpush.msra.mxu1 %v97_v2  ;;  %v95_v5 = vld [vmem:[%s414_s3 + $0x68] sm:$0xff]  ;;  %v44_v6 = vld [vmem:[#allocation2] sm:$0xff]  ;;  %v93_v9 = vld [vmem:[%s414_s3 + $0x58] sm:$0xff] }
   0x9   :  { %69 = vmatpush.msra.mxu0 %v46_v1  ;;  %v43_v7 = vld [vmem:[%s411_s0] sm:$0xff]  ;;  %v92_v10 = vld [vmem:[%s414_s3 + $0x50] sm:$0xff]  ;;  %v91_v11 = vld [vmem:[%s414_s3 + $0x48] sm:$0xff] }
   0xa   :  { %103 = vmatpush.msra.mxu1 %v96_v4  ;;  %v94_v8 = vld [vmem:[%s414_s3 + $0x60] sm:$0xff]  ;;  %v89_v13 = vld [vmem:[%s414_s3 + $0x38] sm:$0xff]  ;;  %v88_v14 = vld [vmem:[%s414_s3 + $0x30] sm:$0xff] }
   0xb   :  { %70 = vmatpush.msra.mxu0 %v45_v3  ;;  %v90_v12 = vld [vmem:[%s414_s3 + $0x40] sm:$0xff]  ;;  %v87_v15 = vld [vmem:[%s414_s3 + $0x28] sm:$0xff]  ;;  %v85_v17 = vld [vmem:[%s414_s3 + $0x18] sm:$0xff] }
   0xc   :  { %104 = vmatpush.msra.mxu1 %v95_v5  ;;  %v86_v16 = vld [vmem:[%s414_s3 + $0x20] sm:$0xff]  ;;  %v84_v18 = vld [vmem:[%s414_s3 + $0x10] sm:$0xff]  ;;  %v83_v19 = vld [vmem:[%s414_s3 + $0x8] sm:$0xff] }
   0xd   :  { %71 = vmatpush.msra.mxu0 %v44_v6  ;;  %v82_v20 = vld [vmem:[%s414_s3] sm:$0xff]  ;;  %v143_v21 = vld [vmem:[%s416_s5 + $0x78] sm:$0xff]  ;;  %v142_v22 = vld [vmem:[%s416_s5 + $0x70] sm:$0xff] }
   0xe   :  { %187 = vmatmul.msk.f32.vlgmr.msra.gmra.mxu0 %vm52_vm0, %v43_v7  ;;  %105 = vmatpush.msra.mxu1 %v94_v8  ;;  %v141_v23 = vld [vmem:[%s416_s5 + $0x68] sm:$0xff]  ;;  %v140_v24 = vld [vmem:[%s416_s5 + $0x60] sm:$0xff]  ;;  %v139_v25 = vld [vmem:[%s416_s5 + $0x58] sm:$0xff] }
   0xf   :  { %148 = vmatpush.msra.mxu2 %v143_v21  ;;  %v138_v26 = vld [vmem:[%s416_s5 + $0x50] sm:$0xff]  ;;  %v137_v27 = vld [vmem:[%s416_s5 + $0x48] sm:$0xff]  ;;  %v194_v28 = vld [vmem:[%s413_s2] ss:$0 sm:$0xff] }
  0x10   :  { %106 = vmatpush.msra.mxu1 %v93_v9  ;;  %v136_v36 = vld [vmem:[%s416_s5 + $0x40] sm:$0xff]  ;;  %v135_v37 = vld [vmem:[%s416_s5 + $0x38] sm:$0xff]  ;;  %v134_v38 = vld [vmem:[%s416_s5 + $0x30] sm:$0xff] }
  0x11   :  { %149 = vmatpush.msra.mxu2 %v142_v22  ;;  %v133_v39 = vld [vmem:[%s416_s5 + $0x28] sm:$0xff]  ;;  %v132_v40 = vld [vmem:[%s416_s5 + $0x20] sm:$0xff]  ;;  %v131_v41 = vld [vmem:[%s416_s5 + $0x18] sm:$0xff] }
  0x12   :  { %107 = vmatpush.msra.mxu1 %v92_v10  ;;  %v130_v42 = vld [vmem:[%s416_s5 + $0x10] sm:$0xff]  ;;  %v129_v43 = vld [vmem:[%s416_s5 + $0x8] sm:$0xff]  ;;  %v128_v44 = vld [vmem:[%s416_s5] sm:$0xff]  ;;  %s256_s5 = smov [#allocation5]  }
  0x13   :  { %150 = vmatpush.msra.mxu2 %v141_v23  ;;  %v195_v45 = vld [vmem:[%s415_s4] ss:$0 sm:$0xff]  ;;  %s175_s25 = sshll.u32 %s256_s5, 4  ;;  %s177_s4 = sshll.u32 %s418_s7, 4  ;;  %s176_s25 = int_to_ptr.vmem [resolvable:$true] %s175_s25  ;;  %s178_s4 = int_to_ptr.hbm [resolvable:$true] %s177_s4 }
  0x14   :  { %108 = vmatpush.msra.mxu1 %v91_v11  ;;  %v196_v53 = vld [vmem:[%s417_s6] ss:$0 sm:$0xff] }
  0x15   :  { %151 = vmatpush.msra.mxu2 %v140_v24 }
  0x16   :  { %109 = vmatpush.msra.mxu1 %v90_v12 }
  0x17   :  { %152 = vmatpush.msra.mxu2 %v139_v25 }
  0x18   :  { %110 = vmatpush.msra.mxu1 %v89_v13 }
  0x19   :  { %153 = vmatpush.msra.mxu2 %v138_v26 }
  0x1a   :  { %111 = vmatpush.msra.mxu1 %v88_v14 }
  0x1b   :  { %154 = vmatpush.msra.mxu2 %v137_v27 }
  0x1c   :  { %112 = vmatpush.msra.mxu1 %v87_v15 }
  0x1d   :  { %155 = vmatpush.msra.mxu2 %v136_v36 }
  0x1e   :  { %113 = vmatpush.msra.mxu1 %v86_v16 }
  0x1f   :  { %156 = vmatpush.msra.mxu2 %v135_v37 }
  0x20   :  { %114 = vmatpush.msra.mxu1 %v85_v17 }
  0x21   :  { %157 = vmatpush.msra.mxu2 %v134_v38 }
  0x22   :  { %115 = vmatpush.msra.mxu1 %v84_v18 }
  0x23   :  { %158 = vmatpush.msra.mxu2 %v133_v39 }
  0x24   :  { %116 = vmatpush.msra.mxu1 %v83_v19 }
  0x25   :  { %159 = vmatpush.msra.mxu2 %v132_v40 }
  0x26   :  { %117 = vmatpush.msra.mxu1 %v82_v20 }
  0x27   :  { %160 = vmatpush.msra.mxu2 %v131_v41 }
  0x29   :  { %161 = vmatpush.msra.mxu2 %v130_v42 }
  0x2b   :  { %162 = vmatpush.msra.mxu2 %v129_v43 }
  0x2d   :  { %163 = vmatpush.msra.mxu2 %v128_v44 }
  0x8b   :  { %v73_v29 = vpop.f32.mrf.mxu0 }
  0x8c   :  { %v74_v30 = vadd.f32 %v194_v28, %v73_v29 }
  0x8e   :  { %v77_v31 = vmul.f32 1.442695, %v74_v30  ;;  %vm76_vm1 = vcmp.gt.f32.partialorder %v74_v30, 0.0 }
  0x90   :  { %197 = vpow2.f32 %v77_v31 }
  0x96   :  { %v198_v32 = vpop.eup %197 }
  0x97   :  { %v188_v33 = vadd.f32 -1.0, %v198_v32 }
  0x99   :  { %v80_v34 = vmul.f32 1.6732632, %v188_v33 }
  0x9b   :  { %v81_v35 = vsel %vm76_vm1, %v74_v30, %v80_v34 }
  0x9c   :  { %118 = vmatmul.f32.vlgmr.msra.gmra.mxu1 %v81_v35 }
 0x119   :  { %v119_v46 = vpop.f32.mrf.mxu1 }
 0x11a   :  { %v120_v47 = vadd.f32 %v195_v45, %v119_v46 }
 0x11c   :  { %v123_v48 = vmul.f32 1.442695, %v120_v47  ;;  %vm122_vm2 = vcmp.gt.f32.partialorder %v120_v47, 0.0 }
 0x11e   :  { %199 = vpow2.f32 %v123_v48 }
 0x124   :  { %v200_v49 = vpop.eup %199 }
 0x125   :  { %v189_v50 = vadd.f32 -1.0, %v200_v49 }
 0x127   :  { %v126_v51 = vmul.f32 1.6732632, %v189_v50 }
 0x129   :  { %v127_v52 = vsel %vm122_vm2, %v120_v47, %v126_v51 }
 0x12a   :  { %164 = vmatmul.f32.vlgmr.msra.gmra.mxu2 %v127_v52 }
 0x1ad   :  { %v165_v54 = vpop.f32.mrf.mxu2 }
 0x1ae   :  { %v166_v55 = vadd.f32 %v196_v53, %v165_v54 }
 0x1b0   :  { %169 = vst.msk [vmem:[#allocation5] sm:$0xff] %vm168_vm3, %v166_v55 }
 0x1b1   :  { %180 = dma.vmem_to_hbm [thread:$0]  %s176_s25, 128, %s178_s4, [#allocation4]  }
 0x1b2   :  { %251 = dma.done.wait [#allocation4], 128  }
 0x1b3   :  { %252 = vsyncadd [#allocation4], 4294967168 }
 0x1b4   :  { %185 = vsyncpa [#allocation3], 1 }
 0x1b5   :  { %186 = vsyncpa [#allocation4], 1 }

</bundles_post_ra>
